<compile_context>
chip_gen: v7x
topology: tpu7x:2x2x1
jax: 0.10.0
libtpu: 0.0.40
codegen_flags: <defaults>
</compile_context>

<pallas_src>
import jax
import jax.numpy as jnp
from jax.experimental import pallas as pl
from jax.experimental.pallas import tpu as pltpu


# ------------------------------ Pallas kernels ----------------------------- #

def _relu_conv_bn_kernel(x_ref, w_ref, shift_ref, o_ref):
    # o = W @ relu(x) + shift        (W carries folded BN scale; shift folded BN)
    # x block: (1, C, T) f32 ;  W: (F, C) bf16 ;  shift: (F, 1) f32 ; o: (1, F, T) bf16
    x = jnp.maximum(x_ref[0], 0.0).astype(jnp.bfloat16)                 # VPU
    y = jnp.dot(w_ref[...], x, preferred_element_type=jnp.float32)      # MXU
    o_ref[0] = (y + shift_ref[...]).astype(o_ref.dtype)


def _fr_fused_kernel(a_ref, b_ref, w1_ref, w2_ref, shift_ref, o_ref):
    # Fused factorized reduction (stride-2 taps already extracted):
    #   o[:F/2] = W1 @ relu(a) + shift[:F/2]
    #   o[F/2:] = W2 @ relu(b) + shift[F/2:]
    # a/b blocks: (1, C, T) bf16 ; W1/W2: (F/2, C) bf16 ; o: (1, F, T) bf16
    f2 = w1_ref.shape[0]
    f_tot = o_ref.shape[1]
    a = jnp.maximum(a_ref[0], 0.0)
    b = jnp.maximum(b_ref[0], 0.0)
    y1 = jnp.dot(w1_ref[...], a, preferred_element_type=jnp.float32)    # MXU
    y2 = jnp.dot(w2_ref[...], b, preferred_element_type=jnp.float32)    # MXU
    sh = shift_ref[...]
    # Two lane-dense stores into disjoint channel (sublane) ranges realize the
    # torch.cat([conv1(.), conv2(.)], dim=1) without zero-padded weights.
    o_ref[0, 0:f2, :] = (y1 + sh[0:f2]).astype(o_ref.dtype)
    o_ref[0, f2:f_tot, :] = (y2 + sh[f2:f_tot]).astype(o_ref.dtype)


# ------------------------------ helpers ------------------------------------ #

def _lane_tile(hw, n_batch, t_max=4096):
    """Spatial (lane) tile.  Lane-dense (multiple of 128) unless it spans the
    whole spatial extent.  Guarantees >= 2 grid steps when N == 1 and there is
    enough work, so both v7x TensorCores are fed."""
    t = min(hw, t_max)
    if n_batch == 1 and t == hw and hw >= 1024:
        t = (((hw + 1) // 2) + 511) // 512 * 512
    if t != hw:
        t = max(128, (t // 128) * 128)
    return t


def _compiler_params(step_bytes):
    try:
        cap = int(pltpu.get_tpu_info().vmem_capacity_bytes)
    except Exception:   # query unavailable -> assume the smallest (v7x, 64 MiB)
        cap = 64 * 1024 * 1024
    hi = int(cap * 0.6)                       # ~38 MiB on v7x, ~76 MiB on v5e/v6e
    want = 3 * int(step_bytes) + (8 << 20)    # double-buffered blocks + headroom
    limit = max(16 << 20, min(want, hi))
    return pltpu.CompilerParams(
        dimension_semantics=("parallel", "parallel"),
        vmem_limit_bytes=limit,
    )


def _fold_bn(gamma, beta, mean, var, conv_bias, eps):
    scale = gamma / jnp.sqrt(var + eps)
    shift = beta + (conv_bias - mean) * scale
    return scale, shift


# ------------------------------ call wrappers ------------------------------ #

def relu_conv1x1_bn_nchw(x3, w, shift, out_dtype, *, t_max=4096):
    """x3: (N, C, HW) f32 ; w: (F, C) bf16 (BN scale folded) ; shift: (F, 1) f32.
    Returns (N, F, HW) out_dtype, i.e. NCHW with spatial flattened."""
    n, c, hw = x3.shape
    f = w.shape[0]
    t = _lane_tile(hw, n, t_max)
    out_isz = jnp.dtype(out_dtype).itemsize
    step_bytes = c * t * x3.dtype.itemsize + f * t * out_isz + f * c * 2 + f * 4
    cost = pl.CostEstimate(
        flops=2 * n * hw * c * f,
        transcendentals=0,
        bytes_accessed=n * c * hw * x3.dtype.itemsize + f * c * 2 + f * 4
                       + n * f * hw * out_isz,
    )
    return pl.pallas_call(
        _relu_conv_bn_kernel,
        out_shape=jax.ShapeDtypeStruct((n, f, hw), out_dtype),
        grid_spec=pltpu.PrefetchScalarGridSpec(
            num_scalar_prefetch=0,
            grid=(n, pl.cdiv(hw, t)),
            in_specs=[
                pl.BlockSpec((1, c, t), lambda i, j: (i, 0, j)),
                pl.BlockSpec((f, c), lambda i, j: (0, 0)),
                pl.BlockSpec((f, 1), lambda i, j: (0, 0)),
            ],
            out_specs=pl.BlockSpec((1, f, t), lambda i, j: (i, 0, j)),
        ),
        compiler_params=_compiler_params(step_bytes),
        cost_estimate=cost,
    )(x3, w, shift)


def fused_factorized_reduction_nchw(a3, b3, w1, w2, shift, out_dtype, *, t_max=4096):
    """Single pallas_call for: cat([conv1(relu(a)), conv2(relu(b))], ch) + BN shift.
    a3/b3: (N, C, HoWo) bf16 tap sets ; w1/w2: (F/2, C) bf16 ; shift: (F, 1) f32.
    Returns (N, F, HoWo) out_dtype (NCHW, spatial flattened)."""
    n, c, hw = a3.shape
    f2 = w1.shape[0]
    f = 2 * f2
    t = _lane_tile(hw, n, t_max)
    out_isz = jnp.dtype(out_dtype).itemsize
    step_bytes = 2 * c * t * a3.dtype.itemsize + f * t * out_isz + f * c * 2 + f * 4
    cost = pl.CostEstimate(
        flops=2 * n * hw * c * f,
        transcendentals=0,
        bytes_accessed=2 * n * c * hw * a3.dtype.itemsize + f * c * 2 + f * 4
                       + n * f * hw * out_isz,
    )
    return pl.pallas_call(
        _fr_fused_kernel,
        out_shape=jax.ShapeDtypeStruct((n, f, hw), out_dtype),
        grid_spec=pltpu.PrefetchScalarGridSpec(
            num_scalar_prefetch=0,
            grid=(n, pl.cdiv(hw, t)),
            in_specs=[
                # On v5e with long grids, pipeline_mode=pl.Buffered(3) on these two
                # activation streams is worth a sweep; default double-buffering here.
                pl.BlockSpec((1, c, t), lambda i, j: (i, 0, j)),
                pl.BlockSpec((1, c, t), lambda i, j: (i, 0, j)),
                pl.BlockSpec((f2, c), lambda i, j: (0, 0)),
                pl.BlockSpec((f2, c), lambda i, j: (0, 0)),
                pl.BlockSpec((f, 1), lambda i, j: (0, 0)),
            ],
            out_specs=pl.BlockSpec((1, f, t), lambda i, j: (i, 0, j)),
        ),
        compiler_params=_compiler_params(step_bytes),
        cost_estimate=cost,
    )(a3, b3, w1, w2, shift)


# ------------------------------ glue / params ------------------------------ #

def init_params(key, x_1_channels, num_of_filters):
    """Deterministic synthetic parameters (conv weights stored PyTorch-style (F, C))."""
    c, f = x_1_channels, num_of_filters
    ks = jax.random.split(key, 12)
    p = {
        # Factorized_reduction stride-2 path: conv1 / conv2 (f//2 each) + bn(f)
        "fr_conv1_w": 0.1 * jax.random.normal(ks[0], (f // 2, c), jnp.float32),
        "fr_conv1_b": 0.05 * jax.random.normal(ks[1], (f // 2,), jnp.float32),
        "fr_conv2_w": 0.1 * jax.random.normal(ks[2], (f // 2, c), jnp.float32),
        "fr_conv2_b": 0.05 * jax.random.normal(ks[3], (f // 2,), jnp.float32),
        "fr_bn_gamma": 1.0 + 0.1 * jax.random.normal(ks[4], (f,), jnp.float32),
        "fr_bn_beta": 0.1 * jax.random.normal(ks[5], (f,), jnp.float32),
        "fr_bn_mean": 0.05 * jax.random.normal(ks[6], (f,), jnp.float32),
        "fr_bn_var": 1.0 + 0.1 * jax.random.uniform(ks[7], (f,), jnp.float32),
        # channel-change path: conv(c -> f) + bn(f)
        "conv_w": 0.1 * jax.random.normal(ks[8], (f, c), jnp.float32),
        "conv_b": 0.05 * jax.random.normal(ks[9], (f,), jnp.float32),
        "bn_gamma": 1.0 + 0.1 * jax.random.normal(ks[10], (f,), jnp.float32),
        "bn_beta": 0.1 * jax.random.normal(ks[11], (f,), jnp.float32),
        "bn_mean": jnp.zeros((f,), jnp.float32),
        "bn_var": jnp.ones((f,), jnp.float32),
    }
    # self.conv_ (96->f) / self.bn_ and Factorized_reduction.op_stride1 are never
    # reached by Reduce_prev_layer.forward, so they are omitted.
    return p


def reduce_prev_layer_forward(params, x, x_1, *, x_width, x_1_width,
                              x_1_channels, num_of_filters, eps=1e-3,
                              out_dtype=jnp.bfloat16):
    """Mirrors Reduce_prev_layer.forward (inference-mode BatchNorm).
    Inputs/outputs are NCHW; transformed outputs are emitted in `out_dtype`."""
    if x_1 is None:
        x_1 = x

    if x_width != x_1_width:
        # relu(x_1) -> Factorized_reduction(stride=2): two stride-2 1x1 convs,
        # channel concat, BN.  Tap sets are extracted as single fused
        # slice+cast copies (no NHWC intermediate); relu runs in-kernel.
        n, c, h, w = x_1.shape
        f = num_of_filters
        f2 = f // 2
        ho, wo = (h + 1) // 2, (w + 1) // 2

        a3 = x_1[:, :, 0::2, 0::2].astype(jnp.bfloat16).reshape(n, c, ho * wo)
        if (h % 2) or (w % 2):
            # Odd spatial dims: reference pads one zero row/col before the shift.
            xp = jnp.pad(x_1, ((0, 0), (0, 0), (0, h % 2), (0, w % 2)))
        else:
            xp = x_1                                   # even: shift == [1::2, 1::2]
        b3 = xp[:, :, 1::2, 1::2].astype(jnp.bfloat16).reshape(n, c, ho * wo)

        s1, t1 = _fold_bn(params["fr_bn_gamma"][:f2], params["fr_bn_beta"][:f2],
                          params["fr_bn_mean"][:f2], params["fr_bn_var"][:f2],
                          params["fr_conv1_b"], eps)
        s2, t2 = _fold_bn(params["fr_bn_gamma"][f2:], params["fr_bn_beta"][f2:],
                          params["fr_bn_mean"][f2:], params["fr_bn_var"][f2:],
                          params["fr_conv2_b"], eps)
        w1 = (params["fr_conv1_w"] * s1[:, None]).astype(jnp.bfloat16)   # (f2, C)
        w2 = (params["fr_conv2_w"] * s2[:, None]).astype(jnp.bfloat16)   # (f2, C)
        shift = jnp.concatenate([t1, t2], axis=0).reshape(f, 1).astype(jnp.float32)

        out3 = fused_factorized_reduction_nchw(a3, b3, w1, w2, shift, out_dtype)
        return out3.reshape(n, f, ho, wo)              # already NCHW -> free reshape

    elif x_1_channels != num_of_filters:
        # relu -> 1x1 conv -> BN, all in NCHW orientation (no transposes at all).
        n, c, h, w = x_1.shape
        f = num_of_filters
        x3 = x_1.reshape(n, c, h * w)                  # free contiguous reshape
        s, t = _fold_bn(params["bn_gamma"], params["bn_beta"],
                        params["bn_mean"], params["bn_var"],
                        params["conv_b"], eps)
        wfc = (params["conv_w"] * s[:, None]).astype(jnp.bfloat16)       # (F, C)
        shift = t.reshape(f, 1).astype(jnp.float32)
        out3 = relu_conv1x1_bn_nchw(x3, wfc, shift, out_dtype)
        return out3.reshape(n, f, h, w)                # already NCHW -> free reshape

    return x_1


# ----------------------------- f32 reference ------------------------------- #

def _reference_forward(params, x, x_1, *, x_width, x_1_width,
                       x_1_channels, num_of_filters, eps=1e-3):
    """Pure-jnp f32 mirror of the PyTorch module (for correctness check)."""
    if x_1 is None:
        x_1 = x
    if x_width != x_1_width:
        xr = jnp.maximum(x_1, 0.0)
        a = xr[:, :, 0::2, 0::2]
        y1 = (jnp.einsum("nchw,fc->nfhw", a, params["fr_conv1_w"])
              + params["fr_conv1_b"][None, :, None, None])
        xp = jnp.pad(xr, ((0, 0), (0, 0), (0, 1), (0, 1)))[:, :, 1:, 1:]
        b = xp[:, :, 0::2, 0::2]
        y2 = (jnp.einsum("nchw,fc->nfhw", b, params["fr_conv2_w"])
              + params["fr_conv2_b"][None, :, None, None])
        y = jnp.concatenate([y1, y2], axis=1)
        scale = params["fr_bn_gamma"] / jnp.sqrt(params["fr_bn_var"] + eps)
        y = ((y - params["fr_bn_mean"][None, :, None, None])
             * scale[None, :, None, None]
             + params["fr_bn_beta"][None, :, None, None])
        return y
    elif x_1_channels != num_of_filters:
        xr = jnp.maximum(x_1, 0.0)
        y = (jnp.einsum("nchw,fc->nfhw", xr, params["conv_w"])
             + params["conv_b"][None, :, None, None])
        scale = params["bn_gamma"] / jnp.sqrt(params["bn_var"] + eps)
        y = ((y - params["bn_mean"][None, :, None, None])
             * scale[None, :, None, None]
             + params["bn_beta"][None, :, None, None])
        return y
    return x_1


# ----------------------------------- main ----------------------------------- #

if __name__ == "__main__":
    key = jax.random.PRNGKey(0)
    kp, kx, kx1 = jax.random.split(key, 3)

    N, C, F = 2, 4, 8
    params = init_params(kp, x_1_channels=C, num_of_filters=F)

    x = jax.random.normal(kx, (N, F, 8, 8), jnp.float32)       # current layer (x)
    x_1 = jax.random.normal(kx1, (N, C, 16, 16), jnp.float32)  # previous layer (x_1)

    # Path A: spatial mismatch -> fused factorized reduction (stride 2)
    out_a = reduce_prev_layer_forward(params, x, x_1,
                                      x_width=8, x_1_width=16,
                                      x_1_channels=C, num_of_filters=F)
    out_a = jax.block_until_ready(out_a)
    ref_a = _reference_forward(params, x, x_1, x_width=8, x_1_width=16,
                               x_1_channels=C, num_of_filters=F)
    assert out_a.shape == (N, F, 8, 8) and out_a.dtype == jnp.bfloat16
    assert float(jnp.max(jnp.abs(out_a.astype(jnp.float32) - ref_a))) < 5e-2

    # Path B: same width, channel mismatch -> relu + 1x1 conv + BN
    out_b = reduce_prev_layer_forward(params, x, x_1,
                                      x_width=16, x_1_width=16,
                                      x_1_channels=C, num_of_filters=F)
    out_b = jax.block_until_ready(out_b)
    ref_b = _reference_forward(params, x, x_1, x_width=16, x_1_width=16,
                               x_1_channels=C, num_of_filters=F)
    assert out_b.shape == (N, F, 16, 16) and out_b.dtype == jnp.bfloat16
    assert float(jnp.max(jnp.abs(out_b.astype(jnp.float32) - ref_b))) < 5e-2

    # Path C: no transformation -> identity
    out_c = reduce_prev_layer_forward(params, x, x_1,
                                      x_width=16, x_1_width=16,
                                      x_1_channels=C, num_of_filters=C)
    out_c = jax.block_until_ready(out_c)
    assert out_c.shape == x_1.shape and bool(jnp.all(out_c == x_1))

    print("KERNEL_OK")
</pallas_src>

<mosaic_0001>
module attributes {stable_mosaic.version = 11 : i64} {
  func.func @_fr_fused_kernel(%arg0: i32, %arg1: i32, %arg2: memref<1x4x64xbf16, #tpu.memory_space<vmem>>, %arg3: memref<1x4x64xbf16, #tpu.memory_space<vmem>>, %arg4: memref<4x4xbf16, #tpu.memory_space<vmem>>, %arg5: memref<4x4xbf16, #tpu.memory_space<vmem>>, %arg6: memref<8x1xf32, #tpu.memory_space<vmem>>, %arg7: memref<1x8x64xbf16, #tpu.memory_space<vmem>>) attributes {dimension_semantics = [#tpu.dimension_semantics<parallel>, #tpu.dimension_semantics<parallel>], iteration_bounds = array<i64: 2, 1>, scalar_prefetch = 0 : i64, scratch_operands = 0 : i64, tpu.core_type = #tpu.core_type<tc>, window_params = [{transform_indices = @transform_0, window_bounds = array<i64: 1, 4, 64>}, {transform_indices = @transform_1, window_bounds = array<i64: 1, 4, 64>}, {pipeline_mode = #tpu.pipeline_mode<synchronous>, transform_indices = @transform_2, window_bounds = array<i64: 4, 4>}, {pipeline_mode = #tpu.pipeline_mode<synchronous>, transform_indices = @transform_3, window_bounds = array<i64: 4, 4>}, {pipeline_mode = #tpu.pipeline_mode<synchronous>, transform_indices = @transform_4, window_bounds = array<i64: 8, 1>}, {transform_indices = @transform_5, window_bounds = array<i64: 1, 8, 64>}]} {
    %c0 = arith.constant 0 : index
    %c0_0 = arith.constant 0 : index
    %c0_1 = arith.constant 0 : index
    %0 = vector.load %arg2[%c0, %c0_0, %c0_1] : memref<1x4x64xbf16, #tpu.memory_space<vmem>>, vector<1x4x64xbf16>
    %1 = vector.shape_cast %0 : vector<1x4x64xbf16> to vector<4x64xbf16>
    %cst = arith.constant 0.000000e+00 : bf16
    %2 = vector.broadcast %cst : bf16 to vector<4x64xbf16>
    %3 = arith.maximumf %1, %2 : vector<4x64xbf16>
    %c0_2 = arith.constant 0 : index
    %c0_3 = arith.constant 0 : index
    %c0_4 = arith.constant 0 : index
    %4 = vector.load %arg3[%c0_2, %c0_3, %c0_4] : memref<1x4x64xbf16, #tpu.memory_space<vmem>>, vector<1x4x64xbf16>
    %5 = vector.shape_cast %4 : vector<1x4x64xbf16> to vector<4x64xbf16>
    %cst_5 = arith.constant 0.000000e+00 : bf16
    %6 = vector.broadcast %cst_5 : bf16 to vector<4x64xbf16>
    %7 = arith.maximumf %5, %6 : vector<4x64xbf16>
    %c0_6 = arith.constant 0 : index
    %c0_7 = arith.constant 0 : index
    %8 = vector.load %arg4[%c0_6, %c0_7] : memref<4x4xbf16, #tpu.memory_space<vmem>>, vector<4x4xbf16>
    %cst_8 = arith.constant dense<0.000000e+00> : vector<4x64xf32>
    %9 = tpu.matmul %8, %3, %cst_8 {dimension_numbers = #tpu.dot_dimension_numbers<[1], [0], [0], [1], [0, 0, 1, 1], [], []>} : vector<4x4xbf16>, vector<4x64xbf16>, vector<4x64xf32> -> vector<4x64xf32>
    %c0_9 = arith.constant 0 : index
    %c0_10 = arith.constant 0 : index
    %10 = vector.load %arg5[%c0_9, %c0_10] : memref<4x4xbf16, #tpu.memory_space<vmem>>, vector<4x4xbf16>
    %cst_11 = arith.constant dense<0.000000e+00> : vector<4x64xf32>
    %11 = tpu.matmul %10, %7, %cst_11 {dimension_numbers = #tpu.dot_dimension_numbers<[1], [0], [0], [1], [0, 0, 1, 1], [], []>} : vector<4x4xbf16>, vector<4x64xbf16>, vector<4x64xf32> -> vector<4x64xf32>
    %c0_12 = arith.constant 0 : index
    %c0_13 = arith.constant 0 : index
    %12 = vector.load %arg6[%c0_12, %c0_13] : memref<8x1xf32, #tpu.memory_space<vmem>>, vector<8x1xf32>
    %13 = vector.extract_strided_slice %12 {offsets = [0, 0], sizes = [4, 1], strides = [1, 1]} : vector<8x1xf32> to vector<4x1xf32>
    %14 = vector.broadcast %13 : vector<4x1xf32> to vector<4x64xf32>
    %15 = arith.addf %9, %14 : vector<4x64xf32>
    %16 = arith.truncf %15 : vector<4x64xf32> to vector<4x64xbf16>
    %c0_14 = arith.constant 0 : index
    %c0_15 = arith.constant 0 : index
    %c0_16 = arith.constant 0 : index
    %17 = vector.load %arg7[%c0_14, %c0_15, %c0_16] : memref<1x8x64xbf16, #tpu.memory_space<vmem>>, vector<1x4x64xbf16>
    %18 = vector.shape_cast %17 : vector<1x4x64xbf16> to vector<4x64xbf16>
    %19 = vector.shape_cast %16 : vector<4x64xbf16> to vector<1x4x64xbf16>
    tpu.vector_store %arg7[%c0_14, %c0_15, %c0_16], %19 {strides = array<i32>} : memref<1x8x64xbf16, #tpu.memory_space<vmem>>, vector<1x4x64xbf16>,
    %20 = vector.extract_strided_slice %12 {offsets = [4, 0], sizes = [4, 1], strides = [1, 1]} : vector<8x1xf32> to vector<4x1xf32>
    %21 = vector.broadcast %20 : vector<4x1xf32> to vector<4x64xf32>
    %22 = arith.addf %11, %21 : vector<4x64xf32>
    %23 = arith.truncf %22 : vector<4x64xf32> to vector<4x64xbf16>
    %c0_17 = arith.constant 0 : index
    %c4 = arith.constant 4 : index
    %c0_18 = arith.constant 0 : index
    %24 = vector.load %arg7[%c0_17, %c4, %c0_18] : memref<1x8x64xbf16, #tpu.memory_space<vmem>>, vector<1x4x64xbf16>
    %25 = vector.shape_cast %24 : vector<1x4x64xbf16> to vector<4x64xbf16>
    %26 = vector.shape_cast %23 : vector<4x64xbf16> to vector<1x4x64xbf16>
    tpu.vector_store %arg7[%c0_17, %c4, %c0_18], %26 {strides = array<i32>} : memref<1x8x64xbf16, #tpu.memory_space<vmem>>, vector<1x4x64xbf16>,
    return
  }
  func.func @transform_0(%arg0: i32, %arg1: i32) -> (i32, i32, i32) {
    %c0_i32 = arith.constant 0 : i32
    %c0_i32_0 = arith.constant 0 : i32
    return %arg0, %c0_i32, %arg1 : i32, i32, i32
  }
  func.func @transform_1(%arg0: i32, %arg1: i32) -> (i32, i32, i32) {
    %c0_i32 = arith.constant 0 : i32
    %c0_i32_0 = arith.constant 0 : i32
    return %arg0, %c0_i32, %arg1 : i32, i32, i32
  }
  func.func @transform_2(%arg0: i32, %arg1: i32) -> (i32, i32) {
    %c0_i32 = arith.constant 0 : i32
    %c0_i32_0 = arith.constant 0 : i32
    %c0_i32_1 = arith.constant 0 : i32
    return %c0_i32, %c0_i32_0 : i32, i32
  }
  func.func @transform_3(%arg0: i32, %arg1: i32) -> (i32, i32) {
    %c0_i32 = arith.constant 0 : i32
    %c0_i32_0 = arith.constant 0 : i32
    %c0_i32_1 = arith.constant 0 : i32
    return %c0_i32, %c0_i32_0 : i32, i32
  }
  func.func @transform_4(%arg0: i32, %arg1: i32) -> (i32, i32) {
    %c0_i32 = arith.constant 0 : i32
    %c0_i32_0 = arith.constant 0 : i32
    %c0_i32_1 = arith.constant 0 : i32
    return %c0_i32, %c0_i32_0 : i32, i32
  }
  func.func @transform_5(%arg0: i32, %arg1: i32) -> (i32, i32, i32) {
    %c0_i32 = arith.constant 0 : i32
    %c0_i32_0 = arith.constant 0 : i32
    return %arg0, %c0_i32, %arg1 : i32, i32, i32
  }
}

</mosaic_0001>

<bundles_post_ra>
// kernel: tpu_custom_call.1
= control target key start
LH: loop header
LB: loop body
LE: loop exit
PB: predicated region body
PF: predicated region fallthrough
CT: control target
= control target key end

     0   :  { %10 = vsyncpa [#allocation3], 0  ;;  %s823_s0 = inlined_call_operand.vmem [shape: bf16[2,4,64], index: 0, kind: input, shape index: {}]   ;;  %s824_s1 = inlined_call_operand.vmem [shape: bf16[2,4,64], index: 1, kind: input, shape index: {}]   ;;  %s825_s2 = inlined_call_operand.vmem [shape: bf16[4,4], index: 2, kind: input, shape index: {}]   ;;  %s826_s3 = inlined_call_operand.vmem [shape: bf16[4,4], index: 3, kind: input, shape index: {}]   ;;  %s827_s4 = inlined_call_operand.vmem [shape: f32[8,1], index: 4, kind: input, shape index: {}]   ;;  %s828_s5 = inlined_call_operand.hbm [shape: bf16[2,8,64], index: 5, kind: output, shape index: {}]  }
   0x1   :  { %12 = vsyncpa [#allocation3 + $0x1], 0  ;;  %s699_s18 = smov 0   ;;  %s701_s19 = smov 0  }
   0x2   :  { %s703_s20 = smov 0   ;;  %s705_s21 = smov 0  }
   0x3   :  { %s707_s22 = smov 0   ;;  %s709_s23 = smov 0  }
   0x4 LB: > { %s494_s24 = sadd.s32 4294967295, %s663_s23   ;;  %s495_s25 = sadd.s32 4294967294, %s663_s23   ;;  %s663_s23 = sphi %s709_s23, %s18_s23   ;;  %s659_s22 = sphi %s707_s22, %s835_s22   ;;  %s655_s21 = sphi %s705_s21, %s834_s21   ;;  %s651_s20 = sphi %s703_s20, %s833_s20   ;;  %s647_s19 = sphi %s701_s19, %s832_s19   ;;  %s643_s18 = sphi %s699_s18, %s831_s18  }
   0x5   : > { %s30_s26 = sadd.s32 1, %s659_s22  ;;  %s158_s27 = sadd.s32 1, %s651_s20 }
   0x6   : > { %p32_p0 = scmp.ge.s32.totalorder %s30_s26, 2  ;;  %p168_p1 = scmp.ne.s32.totalorder %s651_s20, %s647_s19 }
   0x7   : > { %p169_p2 = scmp.eq.s32.totalorder %s494_s24, 1  ;;  %p174_p3 = scmp.ne.s32.totalorder %s647_s19, %s643_s18 }
   0x8   : > { %s837_s26 = smov (%p32_p0, %s30_s26), 0  ;;  %p175_p5 = scmp.eq.s32.totalorder %s495_s25, 1 }
   0x9   : > { %p739_p4 = por %p169_p2, %p168_p1  ;;  %s153_s29 = ssub.s32 %s659_s22, %s837_s26 }
   0xa   : > { %p498_p6 = scmp.ge.s32.totalorder %s663_s23, 1  ;;  %p156_p7 = scmp.eq.s32.totalorder %s153_s29, 0 }
   0xb   : > { %p746_p8 = por %p175_p5, %p174_p3  ;;  %p222_p9 = scmp.lt.s32.totalorder %s663_s23, 3 }
   0xc   : > { %s752_s6 = scalar_select %p156_p7, %s651_s20, %s158_s27  }
   0xd   : > { %p223_p10 = pnand %p498_p6, %p222_p9 }
   0xe   : > { %p259_p11 = scmp.lt.s32.totalorder (!%p223_p10), %s655_s21, 1  ;;  %v665_v0 = vmov (!%p223_p10), 0.0   ;;  %v280_v1 = vld [vmem:[%s827_s4] sm:$0xff] (!%p223_p10)  ;;  %vm666_vm0 = vmmov (!%p223_p10), 0   ;;  %v667_v2 = vmov (!%p223_p10), 0   ;;  %vm290_vm1 = vcmask (!%p223_p10), 1041408  }
   0xf   : > { %226 = sbr.rel (%p223_p10) target bundleno = 266 (0x10a), region = 40  ;;  %514 = vmatprep.subr.bf16.mxu0 (!%p223_p10), %v665_v0  ;;  %520 = vmatprep.subr.bf16.mxu1 (!%p223_p10), %v665_v0  ;;  %v278_v9 = vld [vmem:[%s825_s2] sm:$0x3] (!%p223_p10)  ;;  %vm286_vm2 = vcmask (!%p223_p10), 31744   ;;  %s256_s29 = sand.u32 (!%p223_p10), 1, %s647_s19   ;;  %vm335_vm3 = vcmask (!%p223_p10), 517120  }
  0x10   : > { %516 = vmatprep.mubr.msk.bf16.mxu0 (!%p223_p10), %vm666_vm0, %v665_v0  ;;  %522 = vmatprep.mubr.msk.bf16.mxu1 (!%p223_p10), %vm666_vm0, %v665_v0  ;;  %v279_v10 = vld [vmem:[%s826_s3] sm:$0x3] (!%p223_p10)  ;;  %s499_s7 = sshll.u32 (!%p223_p10), %s256_s29, 2  ;;  %s506_s8 = sshll.u32 (!%p223_p10), %s655_s21, 6  ;;  %vm391_vm4 = vcmask (!%p223_p10), 519170  }
  0x11   : > { %584 = vset.pattern.permute.xlu0 (!%p223_p10), %v667_v2  ;;  %s668_s15 = smov (!%p223_p10), [#allocation2]  }
  0x12   : > { %283 = vperm.xlu0 (!%p223_p10), %584, %v280_v1  }
  0x16   : > { %s260_s9 = scalar_select %p259_p11, %s655_s21, 1 }
  0x17   : > { %s394_s21 = scalar_lea.sflag [#allocation3], %s256_s29 }
  0x18   : > { %s500_s10 = sshll.u32 %s260_s9, 1  ;;  %s258_s9 = scalar_lea.vmem [#allocation2], %s499_s7 }
  0x19   : > { %s265_s13 = scalar_lea.vmem %s823_s0, %s500_s10  ;;  %s272_s16 = scalar_lea.vmem %s824_s1, %s500_s10 }
  0x1a   : > { %v274_v3 = vld [vmem:[%s265_s13] sm:$0x3]  ;;  %s408_s10 = sshll.u32 %s258_s9, 4  ;;  %s776_s13 = scalar_lea.hbm %s828_s5, %s506_s8  ;;  %s778_s10 = int_to_ptr.vmem [resolvable:$true] %s408_s10 }
  0x1b   : > { %v276_v4 = vld [vmem:[%s272_s16] sm:$0x3]  ;;  %v275_v5 = vmax.bf16 %v667_v2, %v274_v3  ;;  %s585_s14 = scalar_lea.vmem %s778_s10, 64  ;;  %s589_s16 = sshll.u32 %s668_s15, 4  ;;  %s590_s16 = int_to_ptr.vmem [resolvable:$false] %s589_s16 }
  0x1c   : > { %v277_v6 = vmax.bf16 %v667_v2, %v276_v4  ;;  %p586_p12 = scmp.ne.s32.totalorder %s778_s10, %s585_s14  ;;  %s591_s17 = scalar_lea.vmem %s590_s16, 128 }
  0x1d   : > { %v292_v7 = vsel %vm290_vm1, %v275_v5, 0  ;;  %p592_p1 = scmp.lt.s32.totalorder %s778_s10, %s590_s16  ;;  %p593_p2 = scmp.lt.s32.totalorder %s591_s17, %s585_s14 }
  0x1e   : > { %v343_v8 = vsel %vm290_vm1, %v277_v6, 0  ;;  %515 = vmatpush3.bf16.msra.mxu0 %v292_v7  ;;  %p587_p13 = pnand %p586_p12, %p739_p4 }
  0x1f   : > { %521 = vmatpush3.bf16.msra.mxu1 %v343_v8  ;;  %p594_p3 = por %p593_p2, %p592_p1 }
  0x20   : > { %p588_p0 = pneg %p587_p13 }
  0x21   : > { %517 = vmatmul.mubr.msk.bf16.vlgmr.msra.gmra.mrb[0].mxu0 %vm286_vm2, %v278_v9 }
  0x22   : > { %523 = vmatmul.mubr.msk.bf16.vlgmr.msra.gmra.mrb[0].mxu1 %vm286_vm2, %v279_v10  ;;  %p595_p5 = pnand %p594_p3, %p588_p0 }
  0x91   : > { %v284_v11 = vpop.permute.xlu0 %283 }
  0x92   : > { %v337_v12 = vrot.slane %v284_v11, 4 }
  0xf4   : > { %v328_v13 = vpop.f32.mrb[0].mxu0 }
  0xf5   : > { %v379_v14 = vpop.f32.mrb[0].mxu1  ;;  %v329_v15 = vadd.f32 %v328_v13, %v284_v11  ;;  %v518_v17 = vpop.f32.mrb[1].mxu0 }
  0xf6   : > { %v380_v16 = vadd.f32 %v379_v14, %v337_v12  ;;  %v524_v18 = vpop.f32.mrb[1].mxu1  ;;  %v331_v19 = vpop.f32.mrb[2].mxu0 }
  0xf7   : > { %v382_v20 = vpop.f32.mrb[2].mxu1  ;;  %v334_v21 = vpack.c.bf16 %v329_v15, %v329_v15  ;;  %v519_v23 = vpop.f32.mrb[3].mxu0 }
  0xf8   : > { %v509_v22 = vpack.c.bf16 %v380_v16, %v380_v16  ;;  %v525_v24 = vpop.f32.mrb[3].mxu1 }
  0xf9   : > { %336 = vst.msk [vmem:[%s258_s9] sm:$0x3] %vm335_vm3, %v334_v21 }
  0xfa   : > { %v389_v25 = vrot.slane %v509_v22, 6 }
  0xfc   : > { %392 = vst.msk [vmem:[%s258_s9] sm:$0xc] %vm391_vm4, %v389_v25 }
  0xfd   : > { %598 = shalt.err (!%p595_p5)
}
  0xfe   : > { %s599_s24 = scalar_lea.hbm %s776_s13, 64  ;;  %s603_s29 = scalar_lea.hbm %s828_s5, 128 }
  0xff   : > { %p600_p6 = scmp.ne.s32.totalorder %s776_s13, %s599_s24  ;;  %p604_p10 = scmp.lt.u32.totalorder %s776_s13, %s828_s5 }
 0x100   : > { %p605_p11 = scmp.lt.u32.totalorder %s603_s29, %s599_s24  ;;  %p607_p13 = scmp.lt.u32.totalorder %s599_s24, %s776_s13 }
 0x101   : > { %p601_p7 = pnand %p600_p6, %p739_p4 }
 0x102   : > { %p606_p12 = por %p605_p11, %p604_p10 }
 0x103   : > { %p602_p9 = pneg %p601_p7 }
 0x104   : > { %p608_p0 = por %p607_p13, %p606_p12 }
 0x106   : > { %p609_p1 = pnand %p608_p0, %p602_p9 }
 0x108   : > { %612 = shalt.err (!%p609_p1)
}
 0x109   : > { %526 = dma.vmem_to_hbm [thread:$0]  (%p739_p4), %s778_s10, 64, %s776_s13, %s394_s21  }
 0x10a PF: > { %p532_p2 = scmp.ge.s32.totalorder %s663_s23, 2  ;;  %s420_s9 = sand.u32 1, %s643_s18  }
 0x10b   : > { %s421_s11 = scalar_lea.sflag [#allocation3], %s420_s9 }
 0x10c   : > { %p529_p3 = pnand %p532_p2, %p746_p8 }
 0x10e   : > { %638 = dma.done.wait (!%p529_p3), %s421_s11, 64  }
 0x10f   : > { %640 = vsyncadd (!%p529_p3), %s421_s11, 4294967232  ;;  %s18_s23 = sadd.s32 1, %s663_s23   ;;  %s831_s18 = smov %s647_s19 }
 0x110   : > { %p15_p5 = scmp.ge.s32.totalorder %s18_s23, 4   ;;  %s832_s19 = smov %s651_s20 }
 0x111   : > { %s833_s20 = smov %s752_s6  ;;  %s834_s21 = smov %s659_s22 }
 0x112   : > { %s835_s22 = smov %s837_s26  ;;  %17 = sbr.rel (!%p15_p5) target bundleno = 4 (0x4), region = 78 }
 0x119   :  { %426 = vsyncpa [#allocation3], 1 }
 0x11a   :  { %428 = vsyncpa [#allocation3 + $0x1], 1 }

</bundles_post_ra>
